<compile_context>
chip_gen: v7x
topology: tpu7x:2x2x1
jax: 0.10.0
libtpu: 0.0.40
codegen_flags: <defaults>
</compile_context>

<pallas_src>
import jax
import jax.numpy as jnp
from jax.experimental import pallas as pl
from jax.experimental.pallas import tpu as pltpu


def _round_up(n, m):
    return (n + m - 1) // m * m


def task_head_kernel(x_ref, w1_ref, b1_ref, w2_ref, b2_ref, o_ref):
    """Fused (BN-folded) Linear -> ReLU -> Linear head for one batch tile."""
    # Cast the x tile to bf16 for the MXU; accumulate in f32.
    x = x_ref[...].astype(jnp.bfloat16)                               # [TB, D]

    # Linear1 (BatchNorm already folded into w1/b1).
    h = jnp.dot(x, w1_ref[...], preferred_element_type=jnp.float32)   # [TB, H]
    # Epilogue in f32 (bias + ReLU).
    h = jnp.maximum(h + b1_ref[...], 0.0)

    # Dropout(0.5) is identity in eval mode.
    # TODO(synk): training-mode dropout (pltpu.prng_random_bits mask) not emitted.

    # Linear2.
    out = jnp.dot(h.astype(jnp.bfloat16), w2_ref[...],
                  preferred_element_type=jnp.float32)                 # [TB, C]
    o_ref[...] = out + b2_ref[...]


def task_head_forward(x, params, *, block_b=128):
    """x: [B, D] float32. params: output of prepare_params()."""
    B, D = x.shape
    D_pad, H_pad = params["w1"].shape
    C_pad = params["w2"].shape[1]
    C = params["num_classes"]
    assert D == params["input_dim"]

    # Pad features / batch so every block is (8, 128)-aligned.
    if D_pad != D:
        x = jnp.pad(x, ((0, 0), (0, D_pad - D)))
    TB = min(block_b, _round_up(B, 8))
    B_pad = _round_up(B, TB)
    if B_pad != B:
        x = jnp.pad(x, ((0, B_pad - B), (0, 0)))
    grid = (B_pad // TB,)

    flops = 2 * B_pad * D_pad * H_pad + 2 * B_pad * H_pad * C_pad
    bytes_accessed = (B_pad * D_pad * 4 + B_pad * C_pad * 4          # x, out
                      + D_pad * H_pad * 2 + H_pad * C_pad * 2        # bf16 weights
                      + (H_pad + C_pad) * 4)                         # biases
    vmem_bytes = (2 * TB * (D_pad + C_pad) * 4          # double-buffered x/out tiles
                  + D_pad * H_pad * 2 + H_pad * C_pad * 2            # resident weights
                  + (H_pad + C_pad) * 4                              # biases
                  + 2 * TB * H_pad * 4)                              # f32 intermediate
    vmem_limit = int(min(max(2 * vmem_bytes, 8 << 20), 32 << 20))

    out = pl.pallas_call(
        task_head_kernel,
        out_shape=jax.ShapeDtypeStruct((B_pad, C_pad), jnp.float32),
        grid=grid,
        in_specs=[
            pl.BlockSpec((TB, D_pad), lambda i: (i, 0)),        # x tile
            pl.BlockSpec((D_pad, H_pad), lambda i: (0, 0)),     # w1 (resident)
            pl.BlockSpec((1, H_pad), lambda i: (0, 0)),         # b1 (resident)
            pl.BlockSpec((H_pad, C_pad), lambda i: (0, 0)),     # w2 (resident)
            pl.BlockSpec((1, C_pad), lambda i: (0, 0)),         # b2 (resident)
        ],
        out_specs=pl.BlockSpec((TB, C_pad), lambda i: (i, 0)),
        compiler_params=pltpu.CompilerParams(
            dimension_semantics=("parallel",),
            vmem_limit_bytes=vmem_limit),
        cost_estimate=pl.CostEstimate(
            flops=flops, transcendentals=0, bytes_accessed=bytes_accessed),
    )(x, params["w1"], params["b1"], params["w2"], params["b2"])

    return out[:B, :C]


def init_raw_params(key, input_dim, num_classes):
    """nn.Linear/nn.BatchNorm1d-style params (hidden_layers=2).

    Linear weights are stored pre-transposed as [in, out]; biases / BN params
    as [1, F] so they broadcast over the batch.
    """
    hidden = input_dim // 2
    k1, k2, k3, k4 = jax.random.split(key, 4)

    bound1 = 1.0 / jnp.sqrt(input_dim)
    w1 = jax.random.uniform(k1, (input_dim, hidden), jnp.float32, -bound1, bound1)
    b1 = jax.random.uniform(k2, (1, hidden), jnp.float32, -bound1, bound1)

    bound2 = 1.0 / jnp.sqrt(hidden)
    w2 = jax.random.uniform(k3, (hidden, num_classes), jnp.float32, -bound2, bound2)
    b2 = jax.random.uniform(k4, (1, num_classes), jnp.float32, -bound2, bound2)

    gamma = jnp.ones((1, hidden), jnp.float32)
    beta = jnp.zeros((1, hidden), jnp.float32)
    running_mean = jnp.zeros((1, hidden), jnp.float32)
    running_var = jnp.ones((1, hidden), jnp.float32)

    return dict(w1=w1, b1=b1, gamma=gamma, beta=beta,
                running_mean=running_mean, running_var=running_var,
                w2=w2, b2=b2)


def prepare_params(raw, *, eps=1e-5):
    """Fold eval-mode BatchNorm into Linear1 (in f32), pad to lane-aligned
    shapes, and quantize weights to bf16 once (not per tile)."""
    # BN fold: scale = gamma * rsqrt(var + eps); w1' = w1 * scale;
    # b1' = (b1 - mean) * scale + beta.
    scale = raw["gamma"] * jax.lax.rsqrt(raw["running_var"] + eps)     # [1, H]
    w1f = raw["w1"] * scale                                            # [D, H]
    b1f = (raw["b1"] - raw["running_mean"]) * scale + raw["beta"]      # [1, H]
    w2, b2 = raw["w2"], raw["b2"]

    D, H = w1f.shape
    C = w2.shape[1]
    D_pad, H_pad, C_pad = _round_up(D, 128), _round_up(H, 128), _round_up(C, 128)

    w1p = jnp.zeros((D_pad, H_pad), jnp.float32).at[:D, :H].set(w1f)
    b1p = jnp.zeros((1, H_pad), jnp.float32).at[:, :H].set(b1f)
    w2p = jnp.zeros((H_pad, C_pad), jnp.float32).at[:H, :C].set(w2)
    b2p = jnp.zeros((1, C_pad), jnp.float32).at[:, :C].set(b2)

    return dict(w1=w1p.astype(jnp.bfloat16), b1=b1p,
                w2=w2p.astype(jnp.bfloat16), b2=b2p,
                num_classes=C, input_dim=D)


def task_head_reference(x, raw, eps=1e-5):
    """Plain-JAX f32 reference (unfolded, eval-mode semantics)."""
    h = x @ raw["w1"] + raw["b1"]
    h = (h - raw["running_mean"]) * jax.lax.rsqrt(raw["running_var"] + eps) \
        * raw["gamma"] + raw["beta"]
    h = jnp.maximum(h, 0.0)
    return h @ raw["w2"] + raw["b2"]


if __name__ == "__main__":
    # D=256 -> H=128 (lane-aligned); C=16 gets zero-padded to 128 in-kernel.
    B, input_dim, num_classes = 256, 256, 16

    key = jax.random.PRNGKey(0)
    kx, kp = jax.random.split(key)
    x = jax.random.normal(kx, (B, input_dim), jnp.float32)

    raw = init_raw_params(kp, input_dim, num_classes)
    params = prepare_params(raw)

    out = task_head_forward(x, params, block_b=128)   # grid = (2,)
    out = jax.block_until_ready(out)

    ref = task_head_reference(x, raw)
    assert out.shape == (B, num_classes)
    # bf16 matmul operands with f32 accumulation -> relaxed tolerance vs f32 ref.
    assert jnp.allclose(out, ref, atol=5e-2, rtol=5e-2), "mismatch vs reference"

    print("KERNEL_OK")
</pallas_src>

<mosaic_0001>
module attributes {stable_mosaic.version = 11 : i64} {
  func.func @task_head_kernel(%arg0: i32, %arg1: memref<128x256xf32, #tpu.memory_space<vmem>>, %arg2: memref<256x128xbf16, #tpu.memory_space<vmem>>, %arg3: memref<1x128xf32, #tpu.memory_space<vmem>>, %arg4: memref<128x128xbf16, #tpu.memory_space<vmem>>, %arg5: memref<1x128xf32, #tpu.memory_space<vmem>>, %arg6: memref<128x128xf32, #tpu.memory_space<vmem>>) attributes {dimension_semantics = [#tpu.dimension_semantics<parallel>], iteration_bounds = array<i64: 2>, scalar_prefetch = 0 : i64, scratch_operands = 0 : i64, tpu.core_type = #tpu.core_type<tc>, window_params = [{transform_indices = @transform_0, window_bounds = array<i64: 128, 256>}, {pipeline_mode = #tpu.pipeline_mode<synchronous>, transform_indices = @transform_1, window_bounds = array<i64: 256, 128>}, {pipeline_mode = #tpu.pipeline_mode<synchronous>, transform_indices = @transform_2, window_bounds = array<i64: 1, 128>}, {pipeline_mode = #tpu.pipeline_mode<synchronous>, transform_indices = @transform_3, window_bounds = array<i64: 128, 128>}, {pipeline_mode = #tpu.pipeline_mode<synchronous>, transform_indices = @transform_4, window_bounds = array<i64: 1, 128>}, {transform_indices = @transform_5, window_bounds = array<i64: 128, 128>}]} {
    %c0 = arith.constant 0 : index
    %c0_0 = arith.constant 0 : index
    %0 = vector.load %arg1[%c0, %c0_0] : memref<128x256xf32, #tpu.memory_space<vmem>>, vector<128x256xf32>
    %1 = arith.truncf %0 : vector<128x256xf32> to vector<128x256xbf16>
    %c0_1 = arith.constant 0 : index
    %c0_2 = arith.constant 0 : index
    %2 = vector.load %arg2[%c0_1, %c0_2] : memref<256x128xbf16, #tpu.memory_space<vmem>>, vector<256x128xbf16>
    %cst = arith.constant dense<0.000000e+00> : vector<128x128xf32>
    %3 = tpu.matmul %1, %2, %cst {dimension_numbers = #tpu.dot_dimension_numbers<[1], [0], [0], [1], [0, 0, 1, 1], [], []>} : vector<128x256xbf16>, vector<256x128xbf16>, vector<128x128xf32> -> vector<128x128xf32>
    %c0_3 = arith.constant 0 : index
    %c0_4 = arith.constant 0 : index
    %4 = vector.load %arg3[%c0_3, %c0_4] : memref<1x128xf32, #tpu.memory_space<vmem>>, vector<1x128xf32>
    %5 = vector.broadcast %4 : vector<1x128xf32> to vector<128x128xf32>
    %6 = arith.addf %3, %5 : vector<128x128xf32>
    %cst_5 = arith.constant 0.000000e+00 : f32
    %7 = vector.broadcast %cst_5 : f32 to vector<128x128xf32>
    %8 = arith.maximumf %6, %7 : vector<128x128xf32>
    %9 = arith.truncf %8 : vector<128x128xf32> to vector<128x128xbf16>
    %c0_6 = arith.constant 0 : index
    %c0_7 = arith.constant 0 : index
    %10 = vector.load %arg4[%c0_6, %c0_7] : memref<128x128xbf16, #tpu.memory_space<vmem>>, vector<128x128xbf16>
    %cst_8 = arith.constant dense<0.000000e+00> : vector<128x128xf32>
    %11 = tpu.matmul %9, %10, %cst_8 {dimension_numbers = #tpu.dot_dimension_numbers<[1], [0], [0], [1], [0, 0, 1, 1], [], []>} : vector<128x128xbf16>, vector<128x128xbf16>, vector<128x128xf32> -> vector<128x128xf32>
    %c0_9 = arith.constant 0 : index
    %c0_10 = arith.constant 0 : index
    %12 = vector.load %arg5[%c0_9, %c0_10] : memref<1x128xf32, #tpu.memory_space<vmem>>, vector<1x128xf32>
    %13 = vector.broadcast %12 : vector<1x128xf32> to vector<128x128xf32>
    %14 = arith.addf %11, %13 : vector<128x128xf32>
    %c0_11 = arith.constant 0 : index
    %c0_12 = arith.constant 0 : index
    %15 = vector.load %arg6[%c0_11, %c0_12] : memref<128x128xf32, #tpu.memory_space<vmem>>, vector<128x128xf32>
    tpu.vector_store %arg6[%c0_11, %c0_12], %14 {strides = array<i32>} : memref<128x128xf32, #tpu.memory_space<vmem>>, vector<128x128xf32>,
    return
  }
  func.func @transform_0(%arg0: i32) -> (i32, i32) {
    %c0_i32 = arith.constant 0 : i32
    %c0_i32_0 = arith.constant 0 : i32
    return %arg0, %c0_i32 : i32, i32
  }
  func.func @transform_1(%arg0: i32) -> (i32, i32) {
    %c0_i32 = arith.constant 0 : i32
    %c0_i32_0 = arith.constant 0 : i32
    %c0_i32_1 = arith.constant 0 : i32
    return %c0_i32, %c0_i32_0 : i32, i32
  }
  func.func @transform_2(%arg0: i32) -> (i32, i32) {
    %c0_i32 = arith.constant 0 : i32
    %c0_i32_0 = arith.constant 0 : i32
    %c0_i32_1 = arith.constant 0 : i32
    return %c0_i32, %c0_i32_0 : i32, i32
  }
  func.func @transform_3(%arg0: i32) -> (i32, i32) {
    %c0_i32 = arith.constant 0 : i32
    %c0_i32_0 = arith.constant 0 : i32
    %c0_i32_1 = arith.constant 0 : i32
    return %c0_i32, %c0_i32_0 : i32, i32
  }
  func.func @transform_4(%arg0: i32) -> (i32, i32) {
    %c0_i32 = arith.constant 0 : i32
    %c0_i32_0 = arith.constant 0 : i32
    %c0_i32_1 = arith.constant 0 : i32
    return %c0_i32, %c0_i32_0 : i32, i32
  }
  func.func @transform_5(%arg0: i32) -> (i32, i32) {
    %c0_i32 = arith.constant 0 : i32
    %c0_i32_0 = arith.constant 0 : i32
    return %arg0, %c0_i32 : i32, i32
  }
}

</mosaic_0001>

<bundles_post_ra>
// kernel: tpu_custom_call.1
= control target key start
LH: loop header
LB: loop body
LE: loop exit
PB: predicated region body
PF: predicated region fallthrough
CT: control target
= control target key end

     0   :  { %10 = vsyncpa [#allocation3], 0  ;;  %s1637_s0 = inlined_call_operand.hbm [shape: f32[256,256], index: 0, kind: input, shape index: {}]   ;;  %s1638_s1 = inlined_call_operand.hbm [shape: bf16[256,128], index: 1, kind: input, shape index: {}]   ;;  %s1639_s2 = inlined_call_operand.vmem [shape: f32[1,128], index: 2, kind: input, shape index: {}]   ;;  %s1640_s3 = inlined_call_operand.hbm [shape: bf16[128,128], index: 3, kind: input, shape index: {}]   ;;  %s1641_s4 = inlined_call_operand.vmem [shape: f32[1,128], index: 4, kind: input, shape index: {}]   ;;  %s1642_s5 = inlined_call_operand.hbm [shape: f32[256,128], index: 5, kind: output, shape index: {}]  }
   0x1   :  { %12 = vsyncpa [#allocation3 + $0x1], 0 }
   0x2   :  { %13 = vsyncpa [#allocation6], 0 }
   0x3   :  { %14 = vsyncpa [#allocation4], 0 }
   0x4   :  { %16 = vsyncpa [#allocation4 + $0x1], 0  ;;  %s1325_s18 = smov 0   ;;  %s1327_s19 = smov 0  }
   0x5   :  { %s1329_s20 = smov 0   ;;  %s1331_s21 = smov 0  }
   0x6 LB: > { %s1346_s22 = sadd.s32 4294967295, %s1283_s21   ;;  %s870_s23 = sadd.s32 4294967294, %s1283_s21   ;;  %s1283_s21 = sphi %s1331_s21, %s1662_s21   ;;  %s1279_s20 = sphi %s1329_s20, %s1661_s20   ;;  %s1275_s19 = sphi %s1327_s19, %s1660_s19   ;;  %s1271_s18 = sphi %s1325_s18, %s1659_s18  }
   0x7   : > { %p42_p0 = scmp.ne.s32.totalorder %s1275_s19, %s1271_s18  ;;  %p1643_p1 = scmp.eq.s32.totalorder %s1346_s22, 0 }
   0x8   : > { %p156_p3 = scmp.eq.s32.totalorder %s870_s23, 1  ;;  %p871_p5 = scmp.ge.s32.totalorder %s1283_s21, 1 }
   0x9   : > { %p1355_p4 = por %p1643_p1, %p42_p0  ;;  %p163_p7 = scmp.lt.s32.totalorder %s1283_s21, 3 }
   0xa   : > { %p1360_p6 = por %p156_p3, %p42_p0  ;;  %s1285_s27 = smov [#allocation5]  }
   0xb   : > { %s1646_s24 = scalar_select %p1355_p4, 1, 0 }
   0xc   : > { %s1647_s25 = scalar_select %p1360_p6, 1, 0 }
   0xd   : > { %p1365_p8 = pnand %p871_p5, %p163_p7  ;;  %s175_s28 = sshll.u32 %s1285_s27, 4  ;;  %s1369_s28 = int_to_ptr.vmem [resolvable:$true] %s175_s28 }
   0xe   : > { %s1286_s30 = smov [#allocation7]   ;;  %s1127_s9 = scalar_lea.hbm %s1638_s1, 2048 }
   0xf   : > { %p1042_p9 = pneg %p1365_p8  ;;  %s191_s6 = sshll.u32 %s1286_s30, 4  ;;  %s1380_s6 = int_to_ptr.vmem [resolvable:$true] %s191_s6 }
  0x10   : > { %p1128_p12 = scmp.ne.s32.totalorder %s1638_s1, %s1127_s9  ;;  %p1134_p5 = scmp.lt.u32.totalorder %s1127_s9, %s1638_s1 }
  0x11   : > { %p1376_p11 = pnand %p1042_p9, %p1643_p1 }
  0x13   : > { %p1129_p13 = pneg %p1376_p11 }
  0x15   : > { %p1130_p0 = pnand %p1129_p13, %p1128_p12 }
  0x17   : > { %p1131_p3 = pneg %p1130_p0 }
  0x19   : > { %p1136_p7 = pnand %p1134_p5, %p1131_p3 }
  0x1b   : > { %1139 = shalt.err (!%p1136_p7)
}
  0x1c   : > { %s1140_s14 = scalar_lea.vmem %s1369_s28, 2048  ;;  %p1148_p2 = scmp.lt.s32.totalorder %s1369_s28, %s1369_s28 }
  0x1d   : > { %p1141_p9 = scmp.ne.s32.totalorder %s1369_s28, %s1140_s14  ;;  %p1149_p12 = scmp.lt.s32.totalorder %s1140_s14, %s1140_s14 }
  0x1f   : > { %p1143_p10 = pnand %p1141_p9, %p1129_p13  ;;  %p1150_p0 = por %p1149_p12, %p1148_p2 }
  0x21   : > { %p1144_p1 = pneg %p1143_p10 }
  0x23   : > { %p1151_p6 = pnand %p1150_p0, %p1144_p1 }
  0x25   : > { %1154 = shalt.err (!%p1151_p6)
}
  0x26   : > { %s1287_s15 = smov 64   ;;  %s1288_s16 = smov 4  }
  0x27   : > { %1045 = dma.hbm_to_vmem [thread:$0]  (!%p1376_p11), %s1638_s1, 2048, %s1369_s28, [#allocation6], %s1287_s15, %s1287_s15, %s1288_s16  }
  0x28   : > { %s1155_s7 = scalar_lea.hbm %s1640_s3, 1024 }
  0x29   : > { %p1156_p2 = scmp.ne.s32.totalorder %s1640_s3, %s1155_s7  ;;  %p1162_p10 = scmp.lt.u32.totalorder %s1155_s7, %s1640_s3 }
  0x2b   : > { %p1158_p1 = pnand %p1156_p2, %p1129_p13 }
  0x2d   : > { %p1159_p6 = pneg %p1158_p1 }
  0x2f   : > { %p1164_p3 = pnand %p1162_p10, %p1159_p6 }
  0x31   : > { %1167 = shalt.err (!%p1164_p3)
}
  0x32   : > { %s1168_s28 = scalar_lea.vmem %s1380_s6, 1024  ;;  %p1176_p12 = scmp.lt.s32.totalorder %s1380_s6, %s1380_s6 }
  0x33   : > { %p1169_p5 = scmp.ne.s32.totalorder %s1380_s6, %s1168_s28  ;;  %p1177_p0 = scmp.lt.s32.totalorder %s1168_s28, %s1168_s28 }
  0x35   : > { %p1171_p7 = pnand %p1169_p5, %p1129_p13  ;;  %p1178_p2 = por %p1177_p0, %p1176_p12 }
  0x37   : > { %p1172_p9 = pneg %p1171_p7 }
  0x39   : > { %p1179_p1 = pnand %p1178_p2, %p1172_p9 }
  0x3b   : > { %1182 = shalt.err (!%p1179_p1)
}
  0x3c   : > { %1048 = dma.hbm_to_vmem [thread:$0]  (!%p1376_p11), %s1640_s3, 1024, %s1380_s6, [#allocation6], %s1287_s15, %s1287_s15, %s1288_s16  }
  0x3d   : > { %s1435_s14 = sadd.s32 1, %s1283_s21   ;;  %s29_s29 = sadd.s32 1, %s1279_s20 }
  0x3e   : > { %s26_s17 = ssub.s32 %s1283_s21, %s1435_s14  ;;  %p36_p13 = scmp.ne.s32.totalorder %s1279_s20, %s1275_s19 }
  0x3f   : > { %p27_p6 = scmp.eq.s32.totalorder %s26_s17, 0  ;;  %p37_p10 = scmp.eq.s32.totalorder %s1283_s21, 0 }
  0x40   : > { %p1650_p3 = scmp.eq.s32.totalorder %s1346_s22, 1  ;;  %p1059_p7 = scmp.lt.s32.totalorder %s1283_s21, 2 }
  0x41   : > { %s1451_s27 = scalar_select %p27_p6, %s1279_s20, %s29_s29  }
  0x42   : > { %p1445_p5 = por %p1650_p3, %p36_p13  ;;  %p38_p9 = por %p37_p10, %p36_p13 }
  0x43   : > { %s208_s30 = sand.u32 1, %s1279_s20   ;;  %s916_s6 = sshll.u32 %s1283_s21, 12 }
  0x44   : > { %s1651_s23 = scalar_select %p1445_p5, 1, 0 }
  0x45   : > { %s875_s7 = sshll.u32 %s208_s30, 8  ;;  %s1458_s8 = scalar_lea.hbm %s1637_s0, %s916_s6 }
  0x46   : > { %s212_s9 = scalar_lea.vmem [#allocation2], %s875_s7  ;;  %p1462_p11 = pnand %p1059_p7, %p38_p9 }
  0x47   : > { %s220_s10 = sshll.u32 %s212_s9, 4  ;;  %s1466_s28 = scalar_lea.sflag [#allocation3], %s208_s30  ;;  %s1460_s10 = int_to_ptr.vmem [resolvable:$true] %s220_s10 }
  0x48   : > { %s1183_s12 = scalar_lea.hbm %s1458_s8, 4096  ;;  %p1185_p0 = pneg %p1462_p11 }
  0x49   : > { %p1184_p12 = scmp.ne.s32.totalorder %s1458_s8, %s1183_s12  ;;  %s1188_s17 = scalar_lea.hbm %s1637_s0, 8192 }
  0x4a   : > { %p1189_p13 = scmp.lt.u32.totalorder %s1458_s8, %s1637_s0  ;;  %p1190_p6 = scmp.lt.u32.totalorder %s1188_s17, %s1183_s12 }
  0x4b   : > { %p1186_p2 = pnand %p1185_p0, %p1184_p12  ;;  %p1192_p3 = scmp.lt.u32.totalorder %s1183_s12, %s1458_s8 }
  0x4c   : > { %p1191_p10 = por %p1190_p6, %p1189_p13 }
  0x4d   : > { %p1187_p1 = pneg %p1186_p2 }
  0x4e   : > { %p1193_p7 = por %p1192_p3, %p1191_p10 }
  0x50   : > { %p1194_p9 = pnand %p1193_p7, %p1187_p1 }
  0x52   : > { %1197 = shalt.err (!%p1194_p9)
}
  0x53   : > { %s1198_s30 = scalar_lea.vmem %s1460_s10, 4096  ;;  %s1289_s15 = smov [#allocation2]  }
  0x54   : > { %p1199_p12 = scmp.ne.s32.totalorder %s1460_s10, %s1198_s30  ;;  %s1203_s16 = sshll.u32 %s1289_s15, 4  ;;  %s1204_s16 = int_to_ptr.vmem [resolvable:$false] %s1203_s16 }
  0x55   : > { %s1205_s9 = scalar_lea.vmem %s1204_s16, 8192  ;;  %p1206_p4 = scmp.lt.s32.totalorder %s1460_s10, %s1204_s16 }
  0x56   : > { %p1201_p2 = pnand %p1199_p12, %p1185_p0  ;;  %p1207_p13 = scmp.lt.s32.totalorder %s1205_s9, %s1198_s30 }
  0x58   : > { %p1202_p5 = pneg %p1201_p2  ;;  %p1208_p6 = por %p1207_p13, %p1206_p4 }
  0x5a   : > { %p1209_p10 = pnand %p1208_p6, %p1202_p5 }
  0x5c   : > { %1212 = shalt.err (!%p1209_p10)
}
  0x5d   : > { %s1290_s12 = smov 256   ;;  %s1291_s13 = smov 16  }
  0x5e   : > { %1052 = dma.hbm_to_vmem [thread:$0]  (!%p1462_p11), %s1458_s8, 4096, %s1460_s10, %s1466_s28, %s1290_s12, %s1290_s12, %s1291_s13  }
  0x5f   : > { %232 = sbr.rel (%p1365_p8) target bundleno = 650 (0x28a), region = 40  ;;  %s1497_s29 = sand.u32 (!%p1365_p8), 1, %s1275_s19  }
  0x60   : > { %s880_s17 = sshll.u32 (!%p1365_p8), %s1497_s29, 8  ;;  %s235_s7 = scalar_lea.sflag (!%p1365_p8), [#allocation3], %s1497_s29 }
  0x61   : > { %s1501_s6 = scalar_lea.vmem (!%p1365_p8), [#allocation2], %s880_s17  ;;  %p1653_p4 = scmp.ne.s32.totalorder (!%p1365_p8), %s1646_s24, 0 }
  0x66   : > { %1258 = dma.done.wait (%p1653_p4), %s235_s7, 4096  }
  0x67   : > { %1260 = vsyncadd (%p1653_p4), %s235_s7, 4294963200  ;;  %p1654_p5 = scmp.eq.s32.totalorder %s1346_s22, 0 }
  0x69   : > { %1262 = dma.done.wait (%p1654_p5), [#allocation6], 3072   ;;  %p1655_p8 = pmov %p1654_p5 }
  0x6a   : > { %v1103_v0 = vld [vmem:[#allocation5 + $0x40] sm:$0xff]   ;;  %v1105_v2 = vld [vmem:[#allocation5 + $0x48] sm:$0xff]   ;;  %v1107_v4 = vld [vmem:[#allocation5 + $0x50] sm:$0xff]   ;;  %s883_s8 = sshll.u32 %s1497_s29, 7  ;;  %s917_s30 = sshll.u32 %s1346_s22, 11 }
  0x6b   : > { %1264 = vsyncadd (%p1655_p8), [#allocation6], 4294964224  ;;  %v1104_v1 = vld [vmem:[#allocation5] sm:$0xff]   ;;  %918 = vmatprep.subr.bf16.mxu0 %v1103_v0  ;;  %v1106_v3 = vld [vmem:[#allocation5 + $0x8] sm:$0xff]   ;;  %s1568_s28 = scalar_lea.vmem [#allocation8], %s883_s8  ;;  %s1588_s12 = scalar_lea.hbm %s1642_s5, %s917_s30 }
  0x6c   : > { %919 = vmatpush3.bf16.msra.mxu0 %v1104_v1  ;;  %v1108_v5 = vld [vmem:[#allocation5 + $0x10] sm:$0xff]   ;;  %v1109_v6 = vld [vmem:[#allocation5 + $0x58] sm:$0xff]   ;;  %v1111_v8 = vld [vmem:[#allocation5 + $0x60] sm:$0xff]   ;;  %s778_s15 = sshll.u32 %s1568_s28, 4  ;;  %s765_s22 = scalar_lea.sflag [#allocation4], %s1497_s29  ;;  %s1590_s15 = int_to_ptr.vmem [resolvable:$true] %s778_s15 }
  0x6d   : > { %920 = vmatprep.subr.bf16.mxu0 %v1105_v2  ;;  %v1110_v7 = vld [vmem:[#allocation5 + $0x18] sm:$0xff]   ;;  %v1112_v9 = vld [vmem:[#allocation5 + $0x20] sm:$0xff]   ;;  %v1113_v10 = vld [vmem:[#allocation5 + $0x68] sm:$0xff]   ;;  %s1213_s13 = scalar_lea.vmem %s1590_s15, 2048  ;;  %p1656_p0 = scmp.ne.s32.totalorder %s1651_s23, 0 }
  0x6e   : > { %v277_v11 = vld [vmem:[%s1501_s6 + $0x8] sm:$0xff]  ;;  %v279_v12 = vld [vmem:[%s1501_s6 + $0x18] sm:$0xff]  ;;  %v1115_v15 = vld [vmem:[#allocation5 + $0x70] sm:$0xff]   ;;  %p1214_p11 = scmp.ne.s32.totalorder %s1590_s15, %s1213_s13  ;;  %s1292_s17 = smov [#allocation8]  }
  0x6f   : > { %v309_v13 = vpack.c.bf16 %v279_v12, %v277_v11  ;;  %v1114_v14 = vld [vmem:[#allocation5 + $0x28] sm:$0xff]   ;;  %v1116_v16 = vld [vmem:[#allocation5 + $0x30] sm:$0xff]   ;;  %v1117_v17 = vld [vmem:[#allocation5 + $0x78] sm:$0xff]   ;;  %s1217_s7 = sshll.u32 %s1292_s17, 4  ;;  %s1218_s7 = int_to_ptr.vmem [resolvable:$false] %s1217_s7 }
  0x70   : > { %921 = vmatpush3.bf16.msra.mxu0 %v1106_v3  ;;  %v1118_v18 = vld [vmem:[#allocation5 + $0x38] sm:$0xff]   ;;  %v276_v19 = vld [vmem:[%s1501_s6] sm:$0xff]  ;;  %v278_v20 = vld [vmem:[%s1501_s6 + $0x10] sm:$0xff]  ;;  %p1215_p1 = pnand %p1214_p11, %p1656_p0  ;;  %p1220_p7 = scmp.lt.s32.totalorder %s1590_s15, %s1218_s7 }
  0x71   : > { %922 = vmatprep.subr.bf16.mxu0 %v1107_v4  ;;  %491 = vmatprep.mubr.bf16.mxu0 %v309_v13  ;;  %v281_v21 = vld [vmem:[%s1501_s6 + $0x28] sm:$0xff]  ;;  %v283_v22 = vld [vmem:[%s1501_s6 + $0x38] sm:$0xff]  ;;  %v1119_v23 = vld [vmem:[#allocation7] sm:$0xff]   ;;  %v308_v26 = vpack.c.bf16 %v278_v20, %v276_v19 }
  0x72   : > { %v1120_v24 = vld [vmem:[#allocation7 + $0x8] sm:$0xff]   ;;  %998 = vmatprep.subr.bf16.mxu1 %v1119_v23  ;;  %v1121_v25 = vld [vmem:[#allocation7 + $0x10] sm:$0xff]   ;;  %v311_v27 = vpack.c.bf16 %v283_v22, %v281_v21  ;;  %v280_v28 = vld [vmem:[%s1501_s6 + $0x20] sm:$0xff]  ;;  %p1216_p3 = pneg %p1215_p1 }
  0x73   : > { %999 = vmatpush3.bf16.msra.mxu1 %v1119_v23  ;;  %v282_v29 = vld [vmem:[%s1501_s6 + $0x30] sm:$0xff]  ;;  %v285_v30 = vld [vmem:[%s1501_s6 + $0x48] sm:$0xff]  ;;  %v287_v31 = vld [vmem:[%s1501_s6 + $0x58] sm:$0xff] }
  0x74   : > { %923 = vmatpush3.bf16.msra.mxu0 %v1108_v5  ;;  %1000 = vmatprep.subr.bf16.mxu1 %v1120_v24  ;;  %v310_v32 = vpack.c.bf16 %v282_v29, %v280_v28  ;;  %v313_v33 = vpack.c.bf16 %v287_v31, %v285_v30  ;;  %v284_v34 = vld [vmem:[%s1501_s6 + $0x40] sm:$0xff]  ;;  %v286_v35 = vld [vmem:[%s1501_s6 + $0x50] sm:$0xff]  ;;  %v289_v36 = vld [vmem:[%s1501_s6 + $0x68] sm:$0xff] }
  0x75   : > { %924 = vmatprep.subr.bf16.mxu0 %v1109_v6  ;;  %v291_v37 = vld [vmem:[%s1501_s6 + $0x78] sm:$0xff]  ;;  %v312_v38 = vpack.c.bf16 %v286_v35, %v284_v34  ;;  %v288_v40 = vld [vmem:[%s1501_s6 + $0x60] sm:$0xff]  ;;  %v290_v41 = vld [vmem:[%s1501_s6 + $0x70] sm:$0xff] }
  0x76   : > { %v315_v39 = vpack.c.bf16 %v291_v37, %v289_v36  ;;  %v293_v42 = vld [vmem:[%s1501_s6 + $0x88] sm:$0xff]  ;;  %v295_v43 = vld [vmem:[%s1501_s6 + $0x98] sm:$0xff]  ;;  %v314_v44 = vpack.c.bf16 %v290_v41, %v288_v40  ;;  %v292_v46 = vld [vmem:[%s1501_s6 + $0x80] sm:$0xff] }
  0x77   : > { %1001 = vmatpush3.bf16.msra.mxu1 %v1120_v24  ;;  %v317_v45 = vpack.c.bf16 %v295_v43, %v293_v42  ;;  %v294_v47 = vld [vmem:[%s1501_s6 + $0x90] sm:$0xff]  ;;  %v297_v48 = vld [vmem:[%s1501_s6 + $0xa8] sm:$0xff]  ;;  %v299_v49 = vld [vmem:[%s1501_s6 + $0xb8] sm:$0xff] }
  0x78   : > { %925 = vmatpush3.bf16.msra.mxu0 %v1110_v7  ;;  %1002 = vmatprep.subr.bf16.mxu1 %v1121_v25  ;;  %v316_v50 = vpack.c.bf16 %v294_v47, %v292_v46  ;;  %v319_v51 = vpack.c.bf16 %v299_v49, %v297_v48  ;;  %v296_v52 = vld [vmem:[%s1501_s6 + $0xa0] sm:$0xff]  ;;  %v298_v53 = vld [vmem:[%s1501_s6 + $0xb0] sm:$0xff]  ;;  %v301_v54 = vld [vmem:[%s1501_s6 + $0xc8] sm:$0xff] }
  0x79   : > { %926 = vmatprep.subr.bf16.mxu0 %v1111_v8  ;;  %v303_v55 = vld [vmem:[%s1501_s6 + $0xd8] sm:$0xff]  ;;  %v318_v56 = vpack.c.bf16 %v298_v53, %v296_v52  ;;  %v300_v58 = vld [vmem:[%s1501_s6 + $0xc0] sm:$0xff]  ;;  %v302_v59 = vld [vmem:[%s1501_s6 + $0xd0] sm:$0xff] }
  0x7a   : > { %v321_v57 = vpack.c.bf16 %v303_v55, %v301_v54  ;;  %v305_v60 = vld [vmem:[%s1501_s6 + $0xe8] sm:$0xff]  ;;  %v307_v61 = vld [vmem:[%s1501_s6 + $0xf8] sm:$0xff]  ;;  %v320_v62 = vpack.c.bf16 %v302_v59, %v300_v58  ;;  %v304_v0 = vld [vmem:[%s1501_s6 + $0xe0] sm:$0xff] }
  0x7b   : > { %1003 = vmatpush3.bf16.msra.mxu1 %v1121_v25  ;;  %v323_v63 = vpack.c.bf16 %v307_v61, %v305_v60  ;;  %v306_v1 = vld [vmem:[%s1501_s6 + $0xf0] sm:$0xff]  ;;  %v1122_v3 = vld [vmem:[#allocation7 + $0x18] sm:$0xff]   ;;  %v1123_v4 = vld [vmem:[#allocation7 + $0x20] sm:$0xff]   ;;  %s1219_s6 = scalar_lea.vmem %s1218_s7, 4096 }
  0x7c   : > { %927 = vmatpush3.bf16.msra.mxu0 %v1112_v9  ;;  %v322_v2 = vpack.c.bf16 %v306_v1, %v304_v0  ;;  %1004 = vmatprep.subr.bf16.mxu1 %v1122_v3  ;;  %v1124_v5 = vld [vmem:[#allocation7 + $0x28] sm:$0xff]   ;;  %v1125_v6 = vld [vmem:[#allocation7 + $0x30] sm:$0xff]   ;;  %v1126_v7 = vld [vmem:[#allocation7 + $0x38] sm:$0xff]   ;;  %p1221_p9 = scmp.lt.s32.totalorder %s1219_s6, %s1213_s13 }
  0x7d   : > { %928 = vmatprep.subr.bf16.mxu0 %v1113_v10  ;;  %v1546_v10 = vld [vmem:[%s1639_s2] ss:$0 sm:$0xff] }
  0x7e   : > { %p1222_p12 = por %p1221_p9, %p1220_p7 }
  0x7f   : > { %1005 = vmatpush3.bf16.msra.mxu1 %v1122_v3 }
  0x80   : > { %929 = vmatpush3.bf16.msra.mxu0 %v1114_v14  ;;  %1006 = vmatprep.subr.bf16.mxu1 %v1123_v4  ;;  %p1223_p2 = pnand %p1222_p12, %p1216_p3 }
  0x81   : > { %930 = vmatprep.subr.bf16.mxu0 %v1115_v15 }
  0x83   : > { %1007 = vmatpush3.bf16.msra.mxu1 %v1123_v4 }
  0x84   : > { %931 = vmatpush3.bf16.msra.mxu0 %v1116_v16  ;;  %1008 = vmatprep.subr.bf16.mxu1 %v1124_v5 }
  0x85   : > { %932 = vmatprep.subr.bf16.mxu0 %v1117_v17 }
  0x87   : > { %1009 = vmatpush3.bf16.msra.mxu1 %v1124_v5 }
  0x88   : > { %933 = vmatpush3.bf16.msra.mxu0 %v1118_v18  ;;  %1010 = vmatprep.subr.bf16.mxu1 %v1125_v6 }
  0x8b   : > { %492 = vmatmul.mubr.bf16.vlgmr.msra.gmra.mrb[0].mxu0 %v308_v26  ;;  %1011 = vmatpush3.bf16.msra.mxu1 %v1125_v6 }
  0x8c   : > { %499 = vmatprep.mubr.bf16.mxu0 %v311_v27  ;;  %1012 = vmatprep.subr.bf16.mxu1 %v1126_v7 }
  0x8f   : > { %1013 = vmatpush3.bf16.msra.mxu1 %v1126_v7 }
  0x93   : > { %500 = vmatmul.mubr.bf16.gmra.mrb[4].mxu0 %v310_v32 }
  0x94   : > { %507 = vmatprep.mubr.bf16.mxu0 %v313_v33 }
  0x9b   : > { %508 = vmatmul.mubr.bf16.gmra.mrb[8].mxu0 %v312_v38 }
  0x9c   : > { %515 = vmatprep.mubr.bf16.mxu0 %v315_v39 }
  0xa3   : > { %516 = vmatmul.mubr.bf16.gmra.mrb[12].mxu0 %v314_v44 }
  0xa4   : > { %523 = vmatprep.mubr.bf16.mxu0 %v317_v45 }
  0xab   : > { %524 = vmatmul.mubr.bf16.gmra.mrb[16].mxu0 %v316_v50 }
  0xac   : > { %531 = vmatprep.mubr.bf16.mxu0 %v319_v51 }
  0xb3   : > { %532 = vmatmul.mubr.bf16.gmra.mrb[20].mxu0 %v318_v56 }
  0xb4   : > { %539 = vmatprep.mubr.bf16.mxu0 %v321_v57 }
  0xbb   : > { %540 = vmatmul.mubr.bf16.gmra.mrb[24].mxu0 %v320_v62 }
  0xbc   : > { %547 = vmatprep.mubr.bf16.mxu0 %v323_v63 }
  0xc3   : > { %548 = vmatmul.mubr.bf16.gmra.mrb[28].mxu0 %v322_v2 }
 0x15e   : > { %v934_v8 = vpop.f32.mrb[0].mxu0 }
 0x15f   : > { %v935_v9 = vpop.f32.mrb[1].mxu0 }
 0x160   : > { %v936_v11 = vadd.f32 %v935_v9, %v934_v8  ;;  %v937_v12 = vpop.f32.mrb[2].mxu0 }
 0x161   : > { %v938_v13 = vpop.f32.mrb[3].mxu0 }
 0x162   : > { %v939_v14 = vadd.f32 %v938_v13, %v937_v12  ;;  %v494_v15 = vadd.f32 %v936_v11, %v1546_v10 }
 0x164   : > { %v497_v16 = vadd.f32 %v939_v14, %v1546_v10  ;;  %v556_v18 = vmax.f32 %v494_v15, 0.0 }
 0x166   : > { %v940_v17 = vpop.f32.mrb[4].mxu0  ;;  %v557_v19 = vmax.f32 %v497_v16, 0.0 }
 0x167   : > { %v941_v20 = vpop.f32.mrb[5].mxu0 }
 0x168   : > { %v942_v21 = vadd.f32 %v941_v20, %v940_v17  ;;  %v943_v22 = vpop.f32.mrb[6].mxu0  ;;  %v572_v23 = vpack.c.bf16 %v557_v19, %v556_v18 }
 0x169   : > { %v944_v24 = vpop.f32.mrb[7].mxu0 }
 0x16a   : > { %v502_v25 = vadd.f32 %v942_v21, %v1546_v10  ;;  %v945_v26 = vadd.f32 %v944_v24, %v943_v22  ;;  %1014 = vmatprep.mubr.bf16.mxu1 %v572_v23 }
 0x16c   : > { %v505_v27 = vadd.f32 %v945_v26, %v1546_v10  ;;  %v558_v28 = vmax.f32 %v502_v25, 0.0 }
 0x16e   : > { %v559_v29 = vmax.f32 %v505_v27, 0.0  ;;  %v946_v30 = vpop.f32.mrb[8].mxu0 }
 0x16f   : > { %v947_v31 = vpop.f32.mrb[9].mxu0 }
 0x170   : > { %v948_v32 = vadd.f32 %v947_v31, %v946_v30  ;;  %v949_v33 = vpop.f32.mrb[10].mxu0  ;;  %v573_v34 = vpack.c.bf16 %v559_v29, %v558_v28 }
 0x171   : > { %v950_v35 = vpop.f32.mrb[11].mxu0 }
 0x172   : > { %v510_v36 = vadd.f32 %v948_v32, %v1546_v10  ;;  %v951_v37 = vadd.f32 %v950_v35, %v949_v33  ;;  %1015 = vmatmul.mubr.bf16.vlgmr.msra.gmra.mrb[0].mxu1 %v573_v34  ;;  %v901_v34 = vld [vmem:[%s1641_s4] ss:$0 sm:$0xff] }
 0x174   : > { %v513_v38 = vadd.f32 %v951_v37, %v1546_v10  ;;  %v560_v39 = vmax.f32 %v510_v36, 0.0 }
 0x176   : > { %v561_v40 = vmax.f32 %v513_v38, 0.0  ;;  %v952_v41 = vpop.f32.mrb[12].mxu0 }
 0x177   : > { %v953_v42 = vpop.f32.mrb[13].mxu0 }
 0x178   : > { %v954_v43 = vadd.f32 %v953_v42, %v952_v41  ;;  %v955_v44 = vpop.f32.mrb[14].mxu0  ;;  %v574_v45 = vpack.c.bf16 %v561_v40, %v560_v39 }
 0x179   : > { %v956_v46 = vpop.f32.mrb[15].mxu0 }
 0x17a   : > { %v518_v47 = vadd.f32 %v954_v43, %v1546_v10  ;;  %v957_v48 = vadd.f32 %v956_v46, %v955_v44  ;;  %1018 = vmatprep.mubr.bf16.mxu1 %v574_v45 }
 0x17c   : > { %v521_v49 = vadd.f32 %v957_v48, %v1546_v10  ;;  %v562_v50 = vmax.f32 %v518_v47, 0.0 }
 0x17e   : > { %v563_v51 = vmax.f32 %v521_v49, 0.0  ;;  %v958_v52 = vpop.f32.mrb[16].mxu0 }
 0x17f   : > { %v959_v53 = vpop.f32.mrb[17].mxu0 }
 0x180   : > { %v960_v54 = vadd.f32 %v959_v53, %v958_v52  ;;  %v961_v55 = vpop.f32.mrb[18].mxu0  ;;  %v575_v56 = vpack.c.bf16 %v563_v51, %v562_v50 }
 0x181   : > { %v962_v57 = vpop.f32.mrb[19].mxu0 }
 0x182   : > { %v526_v58 = vadd.f32 %v960_v54, %v1546_v10  ;;  %v963_v59 = vadd.f32 %v962_v57, %v961_v55  ;;  %1019 = vmatmul.mubr.bf16.gmra.mrb[4].mxu1 %v575_v56 }
 0x184   : > { %v529_v60 = vadd.f32 %v963_v59, %v1546_v10  ;;  %v564_v61 = vmax.f32 %v526_v58, 0.0 }
 0x186   : > { %v565_v62 = vmax.f32 %v529_v60, 0.0  ;;  %v964_v63 = vpop.f32.mrb[20].mxu0 }
 0x187   : > { %v965_v0 = vpop.f32.mrb[21].mxu0 }
 0x188   : > { %v966_v1 = vadd.f32 %v965_v0, %v964_v63  ;;  %v967_v2 = vpop.f32.mrb[22].mxu0  ;;  %v576_v3 = vpack.c.bf16 %v565_v62, %v564_v61 }
 0x189   : > { %v968_v4 = vpop.f32.mrb[23].mxu0 }
 0x18a   : > { %v534_v5 = vadd.f32 %v966_v1, %v1546_v10  ;;  %v969_v6 = vadd.f32 %v968_v4, %v967_v2  ;;  %1022 = vmatprep.mubr.bf16.mxu1 %v576_v3 }
 0x18c   : > { %v537_v7 = vadd.f32 %v969_v6, %v1546_v10  ;;  %v566_v8 = vmax.f32 %v534_v5, 0.0 }
 0x18e   : > { %v567_v9 = vmax.f32 %v537_v7, 0.0  ;;  %v970_v11 = vpop.f32.mrb[24].mxu0 }
 0x18f   : > { %v971_v12 = vpop.f32.mrb[25].mxu0 }
 0x190   : > { %v972_v13 = vadd.f32 %v971_v12, %v970_v11  ;;  %v973_v14 = vpop.f32.mrb[26].mxu0  ;;  %v577_v15 = vpack.c.bf16 %v567_v9, %v566_v8 }
 0x191   : > { %v974_v16 = vpop.f32.mrb[27].mxu0 }
 0x192   : > { %v542_v17 = vadd.f32 %v972_v13, %v1546_v10  ;;  %v975_v18 = vadd.f32 %v974_v16, %v973_v14  ;;  %1023 = vmatmul.mubr.bf16.gmra.mrb[8].mxu1 %v577_v15 }
 0x194   : > { %v545_v19 = vadd.f32 %v975_v18, %v1546_v10  ;;  %v568_v20 = vmax.f32 %v542_v17, 0.0 }
 0x196   : > { %v569_v21 = vmax.f32 %v545_v19, 0.0  ;;  %v976_v22 = vpop.f32.mrb[28].mxu0 }
 0x197   : > { %v977_v23 = vpop.f32.mrb[29].mxu0 }
 0x198   : > { %v978_v24 = vadd.f32 %v977_v23, %v976_v22  ;;  %v979_v25 = vpop.f32.mrb[30].mxu0  ;;  %v578_v26 = vpack.c.bf16 %v569_v21, %v568_v20 }
 0x199   : > { %v980_v27 = vpop.f32.mrb[31].mxu0 }
 0x19a   : > { %v550_v28 = vadd.f32 %v978_v24, %v1546_v10  ;;  %v981_v29 = vadd.f32 %v980_v27, %v979_v25  ;;  %1026 = vmatprep.mubr.bf16.mxu1 %v578_v26 }
 0x19c   : > { %v553_v30 = vadd.f32 %v981_v29, %v1546_v10  ;;  %v570_v31 = vmax.f32 %v550_v28, 0.0 }
 0x19e   : > { %v571_v32 = vmax.f32 %v553_v30, 0.0 }
 0x1a0   : > { %v579_v33 = vpack.c.bf16 %v571_v32, %v570_v31 }
 0x1a2   : > { %1027 = vmatmul.mubr.bf16.gmra.mrb[12].mxu1 %v579_v33 }
 0x245   : > { %v1016_v35 = vpop.f32.mrb[0].mxu1 }
 0x246   : > { %v694_v36 = vadd.f32 %v1016_v35, %v901_v34  ;;  %v685_v37 = vpop.f32.mrb[1].mxu1 }
 0x247   : > { %v686_v38 = vadd.f32 %v901_v34, %v685_v37  ;;  %v1017_v39 = vpop.f32.mrb[2].mxu1 }
 0x248   : > { %750 = vst [vmem:[%s1568_s28 + $0x10] sm:$0xff] %v694_v36  ;;  %v697_v10 = vadd.f32 %v1017_v39, %v901_v34  ;;  %v688_v40 = vpop.f32.mrb[3].mxu1 }
 0x249   : > { %748 = vst [vmem:[%s1568_s28] sm:$0xff] %v686_v38  ;;  %v689_v41 = vadd.f32 %v901_v34, %v688_v40 }
 0x24a   : > { %751 = vst [vmem:[%s1568_s28 + $0x18] sm:$0xff] %v697_v10 }
 0x24b   : > { %749 = vst [vmem:[%s1568_s28 + $0x8] sm:$0xff] %v689_v41 }
 0x255   : > { %v1020_v42 = vpop.f32.mrb[4].mxu1 }
 0x256   : > { %v710_v43 = vadd.f32 %v1020_v42, %v901_v34  ;;  %v701_v44 = vpop.f32.mrb[5].mxu1 }
 0x257   : > { %v702_v45 = vadd.f32 %v901_v34, %v701_v44  ;;  %v1021_v46 = vpop.f32.mrb[6].mxu1 }
 0x258   : > { %754 = vst [vmem:[%s1568_s28 + $0x30] sm:$0xff] %v710_v43  ;;  %v713_v47 = vadd.f32 %v1021_v46, %v901_v34  ;;  %v704_v48 = vpop.f32.mrb[7].mxu1 }
 0x259   : > { %752 = vst [vmem:[%s1568_s28 + $0x20] sm:$0xff] %v702_v45  ;;  %v705_v49 = vadd.f32 %v901_v34, %v704_v48 }
 0x25a   : > { %755 = vst [vmem:[%s1568_s28 + $0x38] sm:$0xff] %v713_v47 }
 0x25b   : > { %753 = vst [vmem:[%s1568_s28 + $0x28] sm:$0xff] %v705_v49 }
 0x265   : > { %v1024_v50 = vpop.f32.mrb[8].mxu1 }
 0x266   : > { %v726_v51 = vadd.f32 %v1024_v50, %v901_v34  ;;  %v717_v52 = vpop.f32.mrb[9].mxu1 }
 0x267   : > { %v718_v53 = vadd.f32 %v901_v34, %v717_v52  ;;  %v1025_v54 = vpop.f32.mrb[10].mxu1 }
 0x268   : > { %758 = vst [vmem:[%s1568_s28 + $0x50] sm:$0xff] %v726_v51  ;;  %v729_v55 = vadd.f32 %v1025_v54, %v901_v34  ;;  %v720_v56 = vpop.f32.mrb[11].mxu1 }
 0x269   : > { %756 = vst [vmem:[%s1568_s28 + $0x40] sm:$0xff] %v718_v53  ;;  %v721_v57 = vadd.f32 %v901_v34, %v720_v56 }
 0x26a   : > { %759 = vst [vmem:[%s1568_s28 + $0x58] sm:$0xff] %v729_v55 }
 0x26b   : > { %757 = vst [vmem:[%s1568_s28 + $0x48] sm:$0xff] %v721_v57 }
 0x275   : > { %v1028_v58 = vpop.f32.mrb[12].mxu1 }
 0x276   : > { %v742_v59 = vadd.f32 %v1028_v58, %v901_v34  ;;  %v733_v60 = vpop.f32.mrb[13].mxu1 }
 0x277   : > { %v734_v61 = vadd.f32 %v901_v34, %v733_v60  ;;  %v1029_v62 = vpop.f32.mrb[14].mxu1 }
 0x278   : > { %762 = vst [vmem:[%s1568_s28 + $0x70] sm:$0xff] %v742_v59  ;;  %v745_v63 = vadd.f32 %v1029_v62, %v901_v34  ;;  %v736_v0 = vpop.f32.mrb[15].mxu1 }
 0x279   : > { %760 = vst [vmem:[%s1568_s28 + $0x60] sm:$0xff] %v734_v61  ;;  %v737_v1 = vadd.f32 %v901_v34, %v736_v0 }
 0x27a   : > { %763 = vst [vmem:[%s1568_s28 + $0x78] sm:$0xff] %v745_v63 }
 0x27b   : > { %761 = vst [vmem:[%s1568_s28 + $0x68] sm:$0xff] %v737_v1 }
 0x27c   : > { %1226 = shalt.err (!%p1223_p2)
}
 0x27d   : > { %s1227_s24 = scalar_lea.hbm %s1588_s12, 2048  ;;  %s1231_s10 = scalar_lea.hbm %s1642_s5, 4096 }
 0x27e   : > { %p1228_p13 = scmp.ne.s32.totalorder %s1588_s12, %s1227_s24  ;;  %p1232_p4 = scmp.lt.u32.totalorder %s1588_s12, %s1642_s5 }
 0x27f   : > { %p1233_p5 = scmp.lt.u32.totalorder %s1231_s10, %s1227_s24  ;;  %p1235_p11 = scmp.lt.u32.totalorder %s1227_s24, %s1588_s12 }
 0x280   : > { %p1229_p6 = pnand %p1228_p13, %p1656_p0 }
 0x281   : > { %p1234_p8 = por %p1233_p5, %p1232_p4 }
 0x282   : > { %p1230_p10 = pneg %p1229_p6 }
 0x283   : > { %p1236_p1 = por %p1235_p11, %p1234_p8 }
 0x285   : > { %p1237_p3 = pnand %p1236_p1, %p1230_p10 }
 0x287   : > { %1240 = shalt.err (!%p1237_p3)
}
 0x288   : > { %s1293_s30 = smov 128   ;;  %s1294_s16 = smov 8  }
 0x289   : > { %1040 = dma.vmem_to_hbm [thread:$0]  (%p1656_p0), %s1590_s15, 2048, %s1588_s12, %s765_s22, %s1293_s30, %s1293_s30, %s1294_s16  }
 0x28a PF: > { %s793_s9 = sand.u32 1, %s1271_s18   ;;  %p1657_p7 = scmp.ne.s32.totalorder %s1647_s25, 0 }
 0x28b   : > { %p1658_p9 = scmp.ge.s32.totalorder %s1283_s21, 2  ;;  %s794_s13 = scalar_lea.sflag [#allocation4], %s793_s9 }
 0x28d   : > { %p1054_p12 = pnand %p1658_p9, %p1657_p7 }
 0x28f   : > { %1266 = dma.done.wait (!%p1054_p12), %s794_s13, 2048  }
 0x290   : > { %1268 = vsyncadd (!%p1054_p12), %s794_s13, 4294965248  ;;  %p19_p2 = scmp.ge.s32.totalorder %s1435_s14, 4   ;;  %s1659_s18 = smov %s1275_s19 }
 0x291   : > { %s1660_s19 = smov %s1279_s20  ;;  %s1661_s20 = smov %s1451_s27 }
 0x292   : > { %s1662_s21 = smov %s1435_s14  ;;  %21 = sbr.rel (!%p19_p2) target bundleno = 6 (0x6), region = 93 }
 0x299   :  { %799 = vsyncpa [#allocation3], 1 }
 0x29a   :  { %801 = vsyncpa [#allocation3 + $0x1], 1 }
 0x29b   :  { %802 = vsyncpa [#allocation6], 1 }
 0x29c   :  { %803 = vsyncpa [#allocation4], 1 }
 0x29d   :  { %805 = vsyncpa [#allocation4 + $0x1], 1 }

</bundles_post_ra>
